<compile_context>
chip_gen: v6e
topology: v6e:2x2x1
jax: 0.10.0
libtpu: 0.0.40
codegen_flags: <defaults>
</compile_context>

<pallas_src>
import functools
import math

import jax
import jax.numpy as jnp
from jax.experimental import pallas as pl
from jax.experimental.pallas import tpu as pltpu

# Matmul operand dtype: bf16 on TPU MXU, f32 on any non-TPU (interpret/CPU) path.
MM_DTYPE = jnp.bfloat16 if jax.default_backend() == "tpu" else jnp.float32
# Inter-kernel activation dtype (halves HBM traffic between layers).
ACT_DTYPE = jnp.bfloat16

VMEM_LIMIT_BYTES = 48 * 1024 * 1024  # safe under v7x 64 MiB, raises v5e/v6e defaults

# Preferred tile sizes (256-aligned for v6e/v7x MXU).
TM_PREF = 256
TN_PREF = 256
TK_PREF = 512
TH_PREF = 512


def _tile(dim, pref, align):
    """Largest tile <= pref that divides dim and is `align`-aligned.

    Falls back to the full dim only when dim <= pref or no aligned divisor exists
    (avoids the old full-dimension fallback that blew VMEM for large vocab/hidden).
    """
    if dim <= pref:
        return dim
    t = (pref // align) * align
    while t >= align:
        if dim % t == 0:
            return t
        t -= align
    return dim  # TODO(synk): masked last tile for awkward (non-aligned) dims


# ----------------------------------------------------------------------------
# Pallas kernels
# ----------------------------------------------------------------------------
def attention_block_kernel(scale, eps, H, causal,
                           q_ref, kv_ref, valid_ref,
                           wq_ref, wkv_ref, wo_ref,
                           bo_ref, g_ref, b_ref, o_ref):
    """Fused attention: fused QKV projections + masked softmax + ctx + out proj
    + residual + LayerNorm.

    q_ref: (tq, E) bf16, kv_ref: (Lk, E) bf16, valid_ref: (1, Lk) f32,
    wq_ref: (E, E), wkv_ref: (E, 2E), wo_ref: (E, E) in MM_DTYPE (block-diagonal
    per-head projections prebuilt in glue), output: (tq, E) ACT_DTYPE.
    """
    q_in = q_ref[...]                              # (tq, E) also the residual
    kx = kv_ref[...]                               # (Lk, E)
    tq, E = q_in.shape
    Lk = kx.shape[0]
    D = E // H

    qxb = q_in.astype(MM_DTYPE)
    kxb = kx.astype(MM_DTYPE)

    # Fused projections: K = E contraction (fills the MXU), one matmul per tensor.
    # 1/sqrt(E) folded into Q once.
    q_all = jnp.dot(qxb, wq_ref[...], preferred_element_type=jnp.float32) * scale
    kv_all = jnp.dot(kxb, wkv_ref[...], preferred_element_type=jnp.float32)
    k_all = kv_all[:, :E]                          # (Lk, E)
    v_all = kv_all[:, E:]                          # (Lk, E)

    # Additive mask bias, computed once (hoisted out of the head loop).
    neg = -1e20 * scale
    if causal:
        q0 = pl.program_id(1) * tq
        row = jax.lax.broadcasted_iota(jnp.int32, (tq, Lk), 0) + q0
        col = jax.lax.broadcasted_iota(jnp.int32, (tq, Lk), 1)
        bias = jnp.where(row >= col, 0.0, neg)             # (tq, Lk)
    else:
        bias = jnp.where(valid_ref[...] != 0.0, 0.0, neg)  # (1, Lk)

    ctx_heads = []
    for h in range(H):   # H is small; TODO(synk): lax.fori_loop for large H
        lo, hi = h * D, (h + 1) * D
        qh = q_all[:, lo:hi].astype(MM_DTYPE)      # (tq, D)
        kh = k_all[:, lo:hi].astype(MM_DTYPE)      # (Lk, D)
        vh = v_all[:, lo:hi].astype(MM_DTYPE)      # (Lk, D)

        # Scores without materializing kh.T (NT dot_general, no XLU transpose).
        e = jax.lax.dot_general(qh, kh, (((1,), (1,)), ((), ())),
                                preferred_element_type=jnp.float32)  # (tq, Lk)
        e = e + bias
        m = jnp.max(e, axis=-1, keepdims=True)
        p = jnp.exp(e - m)
        attn = p / jnp.sum(p, axis=-1, keepdims=True)

        ctx_heads.append(jnp.dot(attn.astype(MM_DTYPE), vh,
                                 preferred_element_type=jnp.float32))  # (tq, D)

    # One lane-dense output projection over the concatenated heads (K = E).
    ctx = jnp.concatenate(ctx_heads, axis=-1).astype(MM_DTYPE)         # (tq, E)
    y = jnp.dot(ctx, wo_ref[...], preferred_element_type=jnp.float32)
    y = y + bo_ref[...] + q_in.astype(jnp.float32)                     # bias + residual

    mean = jnp.mean(y, axis=-1, keepdims=True)
    var = jnp.mean((y - mean) ** 2, axis=-1, keepdims=True)
    out = (y - mean) * jax.lax.rsqrt(var + eps) * g_ref[...] + b_ref[...]
    o_ref[...] = out.astype(o_ref.dtype)


def ffn_block_kernel(eps, x_ref, w1_ref, b1_ref, w2_ref, b2_ref, g_ref, b_ref,
                     o_ref, acc_ref):
    """Fused FFN + residual + LayerNorm, accumulated over hidden-dim tiles."""
    hi = pl.program_id(1)

    @pl.when(hi == 0)
    def _():
        acc_ref[...] = jnp.zeros_like(acc_ref)

    x = x_ref[...]                                                    # (tm, E)
    h = jnp.dot(x.astype(MM_DTYPE), w1_ref[...],
                preferred_element_type=jnp.float32) + b1_ref[...]     # (tm, th)
    h = jnp.maximum(h, 0.0)
    acc_ref[...] += jnp.dot(h.astype(MM_DTYPE), w2_ref[...],
                            preferred_element_type=jnp.float32)       # (tm, E)

    @pl.when(hi == pl.num_programs(1) - 1)
    def _():
        y = acc_ref[...] + b2_ref[...] + x.astype(jnp.float32)        # residual
        mean = jnp.mean(y, axis=-1, keepdims=True)
        var = jnp.mean((y - mean) ** 2, axis=-1, keepdims=True)
        out = (y - mean) * jax.lax.rsqrt(var + eps) * g_ref[...] + b_ref[...]
        o_ref[...] = out.astype(o_ref.dtype)


def linear_bias_kernel(x_ref, w_ref, b_ref, o_ref, acc_ref):
    """Tiled y = x @ W + b with f32 accumulator over K tiles."""
    k = pl.program_id(2)

    @pl.when(k == 0)
    def _():
        acc_ref[...] = jnp.zeros_like(acc_ref)

    acc_ref[...] += jnp.dot(x_ref[...].astype(MM_DTYPE), w_ref[...],
                            preferred_element_type=jnp.float32)

    @pl.when(k == pl.num_programs(2) - 1)
    def _():
        o_ref[...] = acc_ref[...] + b_ref[...]


# ----------------------------------------------------------------------------
# pallas_call wrappers
# ----------------------------------------------------------------------------
def fused_attention(attn_p, ln_g, ln_b, q_in, kv_in, valid, causal, E, H,
                    eps=1e-5):
    """q_in: (N, Lq, E) bf16, kv_in: (N, Lk, E) bf16 (keys == values here),
    valid: (N, 1, Lk) float (0 == masked key).  Returns LayerNorm(attn + q_in)."""
    N, Lq, _ = q_in.shape
    Lk = kv_in.shape[1]
    tq = _tile(Lq, TM_PREF, 8)

    kernel = functools.partial(attention_block_kernel, 1.0 / math.sqrt(E), eps,
                               H, causal)
    return pl.pallas_call(
        kernel,
        out_shape=jax.ShapeDtypeStruct((N, Lq, E), ACT_DTYPE),
        grid=(N, Lq // tq),
        in_specs=[
            pl.BlockSpec((None, tq, E), lambda n, qi: (n, qi, 0)),
            pl.BlockSpec((None, Lk, E), lambda n, qi: (n, 0, 0)),
            pl.BlockSpec((None, 1, Lk), lambda n, qi: (n, 0, 0)),
            pl.BlockSpec((E, E), lambda n, qi: (0, 0)),
            pl.BlockSpec((E, 2 * E), lambda n, qi: (0, 0)),
            pl.BlockSpec((E, E), lambda n, qi: (0, 0)),
            pl.BlockSpec((1, E), lambda n, qi: (0, 0)),
            pl.BlockSpec((1, E), lambda n, qi: (0, 0)),
            pl.BlockSpec((1, E), lambda n, qi: (0, 0)),
        ],
        out_specs=pl.BlockSpec((None, tq, E), lambda n, qi: (n, qi, 0)),
        compiler_params=pltpu.CompilerParams(
            dimension_semantics=("parallel", "parallel"),
            vmem_limit_bytes=VMEM_LIMIT_BYTES),
    )(q_in, kv_in, valid, attn_p["wq"], attn_p["wkv"], attn_p["wo"],
      attn_p["bo"], ln_g, ln_b)


def ffn_layernorm_pallas(x, w1, b1, w2, b2, g, b, eps=1e-5):
    M, E = x.shape
    Fh = w1.shape[1]
    tm = _tile(M, TM_PREF, 8)
    th = _tile(Fh, TH_PREF, 128)
    kernel = functools.partial(ffn_block_kernel, eps)
    return pl.pallas_call(
        kernel,
        out_shape=jax.ShapeDtypeStruct((M, E), ACT_DTYPE),
        grid=(M // tm, Fh // th),
        in_specs=[
            pl.BlockSpec((tm, E), lambda i, h: (i, 0)),
            pl.BlockSpec((E, th), lambda i, h: (0, h)),
            pl.BlockSpec((1, th), lambda i, h: (0, h)),
            pl.BlockSpec((th, E), lambda i, h: (h, 0)),
            pl.BlockSpec((1, E), lambda i, h: (0, 0)),
            pl.BlockSpec((1, E), lambda i, h: (0, 0)),
            pl.BlockSpec((1, E), lambda i, h: (0, 0)),
        ],
        out_specs=pl.BlockSpec((tm, E), lambda i, h: (i, 0)),
        scratch_shapes=[pltpu.VMEM((tm, E), jnp.float32)],
        compiler_params=pltpu.CompilerParams(
            dimension_semantics=("parallel", "arbitrary"),
            vmem_limit_bytes=VMEM_LIMIT_BYTES),
    )(x, w1, b1, w2, b2, g, b)


def linear_pallas(x, w, b):
    M, K = x.shape
    N = w.shape[1]
    tm = _tile(M, TM_PREF, 8)
    tn = _tile(N, TN_PREF, 128)
    tk = _tile(K, TK_PREF, 128)
    return pl.pallas_call(
        linear_bias_kernel,
        out_shape=jax.ShapeDtypeStruct((M, N), jnp.float32),
        grid=(M // tm, N // tn, K // tk),
        in_specs=[
            pl.BlockSpec((tm, tk), lambda i, j, k: (i, k)),
            pl.BlockSpec((tk, tn), lambda i, j, k: (k, j)),
            pl.BlockSpec((1, tn), lambda i, j, k: (0, j)),
        ],
        out_specs=pl.BlockSpec((tm, tn), lambda i, j, k: (i, j)),
        scratch_shapes=[pltpu.VMEM((tm, tn), jnp.float32)],
        compiler_params=pltpu.CompilerParams(
            dimension_semantics=("parallel", "parallel", "arbitrary"),
            vmem_limit_bytes=VMEM_LIMIT_BYTES),
    )(x, w, b)


# ----------------------------------------------------------------------------
# Parameter preparation (done ONCE, off the per-call critical path)
# ----------------------------------------------------------------------------
def prepare_params(params, E, H):
    """Build fused block-diagonal projection weights and cast all matmul weights
    to MM_DTYPE exactly once."""
    def bd(w):  # (D, D) shared head weight -> (E, E) block diagonal
        return jnp.kron(jnp.eye(H, dtype=jnp.float32), w)

    def prep_attn(a):
        return dict(
            wq=bd(a["wq"]).astype(MM_DTYPE),
            wkv=jnp.concatenate([bd(a["wk"]), bd(a["wv"])], axis=1).astype(MM_DTYPE),
            wo=a["wo"].astype(MM_DTYPE),
            bo=a["bo"],
        )

    def prep_tblock(p):
        return dict(
            attn=prep_attn(p["attn"]),
            ln1_g=p["ln1_g"], ln1_b=p["ln1_b"],
            ln2_g=p["ln2_g"], ln2_b=p["ln2_b"],
            w1=p["w1"].astype(MM_DTYPE), b1=p["b1"],
            w2=p["w2"].astype(MM_DTYPE), b2=p["b2"],
        )

    def prep_dblock(p):
        return dict(attn=prep_attn(p["attn"]), ln_g=p["ln_g"], ln_b=p["ln_b"],
                    tblock=prep_tblock(p["tblock"]))

    enc = dict(word_emb=params["enc"]["word_emb"],
               pos_emb=params["enc"]["pos_emb"],
               layers=[prep_tblock(l) for l in params["enc"]["layers"]])
    dec = dict(word_emb=params["dec"]["word_emb"],
               pos_emb=params["dec"]["pos_emb"],
               layers=[prep_dblock(l) for l in params["dec"]["layers"]],
               fc_w=params["dec"]["fc_w"].astype(MM_DTYPE),
               fc_b=params["dec"]["fc_b"])
    return dict(enc=enc, dec=dec)


# ----------------------------------------------------------------------------
# Model glue (embedding gathers / reshapes only)
# ----------------------------------------------------------------------------
def transformer_block(p, value, key, query, valid, E, H):
    # key == value everywhere in this module; fused attention includes norm1.
    del key
    N, Lq, _ = query.shape
    x = fused_attention(p["attn"], p["ln1_g"], p["ln1_b"], query, value, valid,
                        False, E, H)
    out = ffn_layernorm_pallas(x.reshape(-1, E), p["w1"], p["b1"], p["w2"],
                               p["b2"], p["ln2_g"], p["ln2_b"])
    return out.reshape(N, Lq, E)


def decoder_block(p, x, enc_out, src_valid, E, H):
    N, Lt, _ = x.shape
    ones_valid = jnp.ones((N, 1, Lt), jnp.float32)   # trg mask is causal-only
    query = fused_attention(p["attn"], p["ln_g"], p["ln_b"], x, x, ones_valid,
                            True, E, H)
    return transformer_block(p["tblock"], enc_out, enc_out, query, src_valid, E, H)


def pallas_encoder(p, src, src_valid, E, H):
    N, L = src.shape
    out = (p["word_emb"][src] + p["pos_emb"][jnp.arange(L)][None]).astype(ACT_DTYPE)
    for lp in p["layers"]:
        out = transformer_block(lp, out, out, out, src_valid, E, H)
    return out


def pallas_decoder(p, trg, enc_out, src_valid, E, H):
    N, L = trg.shape
    x = (p["word_emb"][trg] + p["pos_emb"][jnp.arange(L)][None]).astype(ACT_DTYPE)
    for lp in p["layers"]:
        x = decoder_block(lp, x, enc_out, src_valid, E, H)
    out = linear_pallas(x.reshape(-1, E), p["fc_w"], p["fc_b"])
    return out.reshape(N, L, -1)


def pallas_transformer(params, src, trg, src_pad_idx, E, H):
    src_valid = (src != src_pad_idx).astype(jnp.float32)[:, None, :]  # (N,1,Ls)
    enc_out = pallas_encoder(params["enc"], src, src_valid, E, H)
    return pallas_decoder(params["dec"], trg, enc_out, src_valid, E, H)


# ----------------------------------------------------------------------------
# Pure-JAX reference (mirrors the kernels' dtype casts for a tight check)
# ----------------------------------------------------------------------------
def _mm(a, b):
    return jnp.dot(a.astype(MM_DTYPE), b.astype(MM_DTYPE),
                   preferred_element_type=jnp.float32)


def ref_layernorm(y, g, b, eps=1e-5):
    mean = jnp.mean(y, axis=-1, keepdims=True)
    var = jnp.mean((y - mean) ** 2, axis=-1, keepdims=True)
    return (y - mean) * jax.lax.rsqrt(var + eps) * g + b


def ref_attention(p, ln_g, ln_b, q_in, kv_in, valid, causal, E, H):
    N, Lq, _ = q_in.shape
    Lk = kv_in.shape[1]
    D = E // H
    scale = 1.0 / math.sqrt(E)
    q4 = q_in.reshape(N, Lq, H, D)
    k4 = kv_in.reshape(N, Lk, H, D)
    qh = _mm(q4, p["wq"]) * scale
    kh = _mm(k4, p["wk"])
    vh = _mm(k4, p["wv"])
    e = jnp.einsum("nqhd,nkhd->nhqk", qh.astype(MM_DTYPE), kh.astype(MM_DTYPE),
                   preferred_element_type=jnp.float32)
    if causal:
        allow = jnp.tril(jnp.ones((Lq, Lk), bool))[None, None]
    else:
        allow = valid[:, None, :, :] != 0.0          # (N,1,1,Lk)
    e = e + jnp.where(allow, 0.0, -1e20 * scale)
    m = jnp.max(e, axis=-1, keepdims=True)
    pe = jnp.exp(e - m)
    attn = pe / jnp.sum(pe, axis=-1, keepdims=True)
    ctx = jnp.einsum("nhqk,nkhd->nqhd", attn.astype(MM_DTYPE), vh.astype(MM_DTYPE),
                     preferred_element_type=jnp.float32).reshape(N, Lq, E)
    out = _mm(ctx, p["wo"]) + p["bo"] + q_in.astype(jnp.float32)
    return ref_layernorm(out, ln_g, ln_b).astype(ACT_DTYPE)


def ref_transformer_block(p, value, key, query, valid, E, H):
    del key
    x = ref_attention(p["attn"], p["ln1_g"], p["ln1_b"], query, value, valid,
                      False, E, H)
    h = jnp.maximum(_mm(x, p["w1"]) + p["b1"], 0.0)
    y = _mm(h, p["w2"]) + p["b2"] + x.astype(jnp.float32)
    return ref_layernorm(y, p["ln2_g"], p["ln2_b"]).astype(ACT_DTYPE)


def ref_decoder_block(p, x, enc_out, src_valid, E, H):
    N, Lt, _ = x.shape
    ones_valid = jnp.ones((N, 1, Lt), jnp.float32)
    query = ref_attention(p["attn"], p["ln_g"], p["ln_b"], x, x, ones_valid,
                          True, E, H)
    return ref_transformer_block(p["tblock"], enc_out, enc_out, query,
                                 src_valid, E, H)


def ref_transformer(params, src, trg, src_pad_idx, E, H):
    src_valid = (src != src_pad_idx).astype(jnp.float32)[:, None, :]
    pe = params["enc"]
    N, Ls = src.shape
    out = (pe["word_emb"][src] + pe["pos_emb"][jnp.arange(Ls)][None]).astype(ACT_DTYPE)
    for lp in pe["layers"]:
        out = ref_transformer_block(lp, out, out, out, src_valid, E, H)
    pd = params["dec"]
    Lt = trg.shape[1]
    x = (pd["word_emb"][trg] + pd["pos_emb"][jnp.arange(Lt)][None]).astype(ACT_DTYPE)
    for lp in pd["layers"]:
        x = ref_decoder_block(lp, x, out, src_valid, E, H)
    return _mm(x, pd["fc_w"]) + pd["fc_b"]


# ----------------------------------------------------------------------------
# Deterministic parameter init
# ----------------------------------------------------------------------------
def init_params(key, src_vocab, trg_vocab, E, H, num_layers, F, max_len):
    keys = iter(jax.random.split(key, 512))

    def nrm(shape, s=0.1):
        return jax.random.normal(next(keys), shape, jnp.float32) * s

    D = E // H

    def attn_params():
        return dict(wq=nrm((D, D)), wk=nrm((D, D)), wv=nrm((D, D)),
                    wo=nrm((E, E)), bo=nrm((1, E)))

    def tblock_params():
        return dict(
            attn=attn_params(),
            ln1_g=1.0 + nrm((1, E)), ln1_b=nrm((1, E)),
            ln2_g=1.0 + nrm((1, E)), ln2_b=nrm((1, E)),
            w1=nrm((E, F * E)), b1=nrm((1, F * E)),
            w2=nrm((F * E, E)), b2=nrm((1, E)),
        )

    def dblock_params():
        return dict(attn=attn_params(),
                    ln_g=1.0 + nrm((1, E)), ln_b=nrm((1, E)),
                    tblock=tblock_params())

    enc = dict(
        word_emb=nrm((src_vocab, E), 1.0),
        pos_emb=nrm((max_len, E), 1.0),
        layers=[tblock_params() for _ in range(num_layers)],
    )
    dec = dict(
        word_emb=nrm((trg_vocab, E), 1.0),
        pos_emb=nrm((max_len, E), 1.0),
        layers=[dblock_params() for _ in range(num_layers)],
        fc_w=nrm((E, trg_vocab)),
        fc_b=nrm((1, trg_vocab)),
    )
    return dict(enc=enc, dec=dec)


# ----------------------------------------------------------------------------
if __name__ == "__main__":
    # Small config consistent with the module's __init__ signature.
    SRC_VOCAB, TRG_VOCAB = 20, 18
    SRC_PAD_IDX = 0
    EMBED, HEADS, LAYERS, FWD_EXP, MAX_LEN = 32, 4, 2, 2, 16
    N, SRC_LEN, TRG_LEN = 2, 8, 6

    key = jax.random.PRNGKey(0)
    k_param, k_src, k_trg = jax.random.split(key, 3)

    params = init_params(
        k_param, SRC_VOCAB, TRG_VOCAB, EMBED, HEADS, LAYERS, FWD_EXP, MAX_LEN
    )
    # Fused / pre-cast weights, built once off the per-call path.
    pparams = prepare_params(params, EMBED, HEADS)

    src = jax.random.randint(k_src, (N, SRC_LEN), 1, SRC_VOCAB, dtype=jnp.int32)
    src = src.at[1, -2:].set(SRC_PAD_IDX)  # some padding in batch 1
    trg = jax.random.randint(k_trg, (N, TRG_LEN), 1, TRG_VOCAB, dtype=jnp.int32)

    out = pallas_transformer(pparams, src, trg, SRC_PAD_IDX, EMBED, HEADS)
    out = jax.block_until_ready(out)

    ref = ref_transformer(params, src, trg, SRC_PAD_IDX, EMBED, HEADS)
    assert out.shape == (N, TRG_LEN, TRG_VOCAB), out.shape
    err = float(jnp.max(jnp.abs(out - ref)))
    assert jnp.allclose(out, ref, atol=2e-2, rtol=2e-2), (
        "mismatch vs reference: max abs err = %e" % err
    )

    print("KERNEL_OK")
</pallas_src>

<mosaic_0001>
module attributes {stable_mosaic.version = 11 : i64} {
  func.func @attention_block_kernel(%arg0: i32, %arg1: i32, %arg2: memref<1x8x32xbf16, #tpu.memory_space<vmem>>, %arg3: memref<1x8x32xbf16, #tpu.memory_space<vmem>>, %arg4: memref<1x1x8xf32, #tpu.memory_space<vmem>>, %arg5: memref<32x32xf32, #tpu.memory_space<vmem>>, %arg6: memref<32x64xf32, #tpu.memory_space<vmem>>, %arg7: memref<32x32xf32, #tpu.memory_space<vmem>>, %arg8: memref<1x32xf32, #tpu.memory_space<vmem>>, %arg9: memref<1x32xf32, #tpu.memory_space<vmem>>, %arg10: memref<1x32xf32, #tpu.memory_space<vmem>>, %arg11: memref<1x8x32xbf16, #tpu.memory_space<vmem>>) attributes {dimension_semantics = [#tpu.dimension_semantics<parallel>, #tpu.dimension_semantics<parallel>], iteration_bounds = array<i64: 2, 1>, scalar_prefetch = 0 : i64, scratch_operands = 0 : i64, tpu.core_type = #tpu.core_type<tc>, window_params = [{transform_indices = @transform_0, window_bounds = array<i64: 1, 8, 32>}, {transform_indices = @transform_1, window_bounds = array<i64: 1, 8, 32>}, {transform_indices = @transform_2, window_bounds = array<i64: 1, 1, 8>}, {pipeline_mode = #tpu.pipeline_mode<synchronous>, transform_indices = @transform_3, window_bounds = array<i64: 32, 32>}, {pipeline_mode = #tpu.pipeline_mode<synchronous>, transform_indices = @transform_4, window_bounds = array<i64: 32, 64>}, {pipeline_mode = #tpu.pipeline_mode<synchronous>, transform_indices = @transform_5, window_bounds = array<i64: 32, 32>}, {pipeline_mode = #tpu.pipeline_mode<synchronous>, transform_indices = @transform_6, window_bounds = array<i64: 1, 32>}, {pipeline_mode = #tpu.pipeline_mode<synchronous>, transform_indices = @transform_7, window_bounds = array<i64: 1, 32>}, {pipeline_mode = #tpu.pipeline_mode<synchronous>, transform_indices = @transform_8, window_bounds = array<i64: 1, 32>}, {transform_indices = @transform_9, window_bounds = array<i64: 1, 8, 32>}]} {
    %c0 = arith.constant 0 : index
    %c0_0 = arith.constant 0 : index
    %c0_1 = arith.constant 0 : index
    %0 = vector.load %arg2[%c0, %c0_0, %c0_1] : memref<1x8x32xbf16, #tpu.memory_space<vmem>>, vector<1x8x32xbf16>
    %1 = vector.shape_cast %0 : vector<1x8x32xbf16> to vector<8x32xbf16>
    %c0_2 = arith.constant 0 : index
    %c0_3 = arith.constant 0 : index
    %c0_4 = arith.constant 0 : index
    %2 = vector.load %arg3[%c0_2, %c0_3, %c0_4] : memref<1x8x32xbf16, #tpu.memory_space<vmem>>, vector<1x8x32xbf16>
    %3 = vector.shape_cast %2 : vector<1x8x32xbf16> to vector<8x32xbf16>
    %4 = arith.extf %1 : vector<8x32xbf16> to vector<8x32xf32>
    %5 = arith.extf %3 : vector<8x32xbf16> to vector<8x32xf32>
    %c0_5 = arith.constant 0 : index
    %c0_6 = arith.constant 0 : index
    %6 = vector.load %arg5[%c0_5, %c0_6] : memref<32x32xf32, #tpu.memory_space<vmem>>, vector<32x32xf32>
    %cst = arith.constant dense<0.000000e+00> : vector<8x32xf32>
    %7 = tpu.matmul %4, %6, %cst {dimension_numbers = #tpu.dot_dimension_numbers<[1], [0], [0], [1], [0, 0, 1, 1], [], []>} : vector<8x32xf32>, vector<32x32xf32>, vector<8x32xf32> -> vector<8x32xf32>
    %cst_7 = arith.constant 0.176776692 : f32
    %8 = vector.broadcast %cst_7 : f32 to vector<8x32xf32>
    %9 = arith.mulf %7, %8 : vector<8x32xf32>
    %c0_8 = arith.constant 0 : index
    %c0_9 = arith.constant 0 : index
    %10 = vector.load %arg6[%c0_8, %c0_9] : memref<32x64xf32, #tpu.memory_space<vmem>>, vector<32x64xf32>
    %cst_10 = arith.constant dense<0.000000e+00> : vector<8x64xf32>
    %11 = tpu.matmul %5, %10, %cst_10 {dimension_numbers = #tpu.dot_dimension_numbers<[1], [0], [0], [1], [0, 0, 1, 1], [], []>} : vector<8x32xf32>, vector<32x64xf32>, vector<8x64xf32> -> vector<8x64xf32>
    %12 = vector.extract_strided_slice %11 {offsets = [0, 0], sizes = [8, 32], strides = [1, 1]} : vector<8x64xf32> to vector<8x32xf32>
    %13 = vector.extract_strided_slice %11 {offsets = [0, 32], sizes = [8, 32], strides = [1, 1]} : vector<8x64xf32> to vector<8x32xf32>
    %c0_11 = arith.constant 0 : index
    %c0_12 = arith.constant 0 : index
    %c0_13 = arith.constant 0 : index
    %14 = vector.load %arg4[%c0_11, %c0_12, %c0_13] : memref<1x1x8xf32, #tpu.memory_space<vmem>>, vector<1x1x8xf32>
    %15 = vector.shape_cast %14 : vector<1x1x8xf32> to vector<1x8xf32>
    %cst_14 = arith.constant 0.000000e+00 : f32
    %16 = vector.broadcast %cst_14 : f32 to vector<1x8xf32>
    %17 = arith.cmpf one, %15, %16 : vector<1x8xf32>
    %cst_15 = arith.constant 0.000000e+00 : f32
    %cst_16 = arith.constant -1.76776698E+19 : f32
    %18 = vector.broadcast %cst_15 : f32 to vector<1x8xf32>
    %19 = vector.broadcast %cst_16 : f32 to vector<1x8xf32>
    %20 = arith.select %17, %18, %19 : vector<1x8xi1>, vector<1x8xf32>
    %21 = vector.extract_strided_slice %9 {offsets = [0, 0], sizes = [8, 8], strides = [1, 1]} : vector<8x32xf32> to vector<8x8xf32>
    %22 = vector.extract_strided_slice %12 {offsets = [0, 0], sizes = [8, 8], strides = [1, 1]} : vector<8x32xf32> to vector<8x8xf32>
    %23 = vector.extract_strided_slice %13 {offsets = [0, 0], sizes = [8, 8], strides = [1, 1]} : vector<8x32xf32> to vector<8x8xf32>
    %cst_17 = arith.constant dense<0.000000e+00> : vector<8x8xf32>
    %24 = tpu.matmul %21, %22, %cst_17 {dimension_numbers = #tpu.dot_dimension_numbers<[1], [1], [0], [0], [0, 0, 1, 0], [], []>} : vector<8x8xf32>, vector<8x8xf32>, vector<8x8xf32> -> vector<8x8xf32>
    %25 = vector.broadcast %20 : vector<1x8xf32> to vector<8x8xf32>
    %26 = arith.addf %24, %25 : vector<8x8xf32>
    %cst_18 = arith.constant dense<0xFF800000> : vector<8xf32>
    %27 = vector.multi_reduction <maximumf>, %26, %cst_18 [1] : vector<8x8xf32> to vector<8xf32>
    %28 = vector.shape_cast %27 : vector<8xf32> to vector<8x1xf32>
    %29 = vector.broadcast %28 : vector<8x1xf32> to vector<8x8xf32>
    %30 = arith.subf %26, %29 : vector<8x8xf32>
    %31 = math.exp %30 : vector<8x8xf32>
    %cst_19 = arith.constant dense<0.000000e+00> : vector<8xf32>
    %32 = vector.multi_reduction <add>, %31, %cst_19 [1] : vector<8x8xf32> to vector<8xf32>
    %33 = vector.shape_cast %32 : vector<8xf32> to vector<8x1xf32>
    %34 = vector.broadcast %33 : vector<8x1xf32> to vector<8x8xf32>
    %35 = arith.divf %31, %34 : vector<8x8xf32>
    %cst_20 = arith.constant dense<0.000000e+00> : vector<8x8xf32>
    %36 = tpu.matmul %35, %23, %cst_20 {dimension_numbers = #tpu.dot_dimension_numbers<[1], [0], [0], [1], [0, 0, 1, 1], [], []>} : vector<8x8xf32>, vector<8x8xf32>, vector<8x8xf32> -> vector<8x8xf32>
    %37 = vector.extract_strided_slice %9 {offsets = [0, 8], sizes = [8, 8], strides = [1, 1]} : vector<8x32xf32> to vector<8x8xf32>
    %38 = vector.extract_strided_slice %12 {offsets = [0, 8], sizes = [8, 8], strides = [1, 1]} : vector<8x32xf32> to vector<8x8xf32>
    %39 = vector.extract_strided_slice %13 {offsets = [0, 8], sizes = [8, 8], strides = [1, 1]} : vector<8x32xf32> to vector<8x8xf32>
    %cst_21 = arith.constant dense<0.000000e+00> : vector<8x8xf32>
    %40 = tpu.matmul %37, %38, %cst_21 {dimension_numbers = #tpu.dot_dimension_numbers<[1], [1], [0], [0], [0, 0, 1, 0], [], []>} : vector<8x8xf32>, vector<8x8xf32>, vector<8x8xf32> -> vector<8x8xf32>
    %41 = vector.broadcast %20 : vector<1x8xf32> to vector<8x8xf32>
    %42 = arith.addf %40, %41 : vector<8x8xf32>
    %cst_22 = arith.constant dense<0xFF800000> : vector<8xf32>
    %43 = vector.multi_reduction <maximumf>, %42, %cst_22 [1] : vector<8x8xf32> to vector<8xf32>
    %44 = vector.shape_cast %43 : vector<8xf32> to vector<8x1xf32>
    %45 = vector.broadcast %44 : vector<8x1xf32> to vector<8x8xf32>
    %46 = arith.subf %42, %45 : vector<8x8xf32>
    %47 = math.exp %46 : vector<8x8xf32>
    %cst_23 = arith.constant dense<0.000000e+00> : vector<8xf32>
    %48 = vector.multi_reduction <add>, %47, %cst_23 [1] : vector<8x8xf32> to vector<8xf32>
    %49 = vector.shape_cast %48 : vector<8xf32> to vector<8x1xf32>
    %50 = vector.broadcast %49 : vector<8x1xf32> to vector<8x8xf32>
    %51 = arith.divf %47, %50 : vector<8x8xf32>
    %cst_24 = arith.constant dense<0.000000e+00> : vector<8x8xf32>
    %52 = tpu.matmul %51, %39, %cst_24 {dimension_numbers = #tpu.dot_dimension_numbers<[1], [0], [0], [1], [0, 0, 1, 1], [], []>} : vector<8x8xf32>, vector<8x8xf32>, vector<8x8xf32> -> vector<8x8xf32>
    %53 = vector.extract_strided_slice %9 {offsets = [0, 16], sizes = [8, 8], strides = [1, 1]} : vector<8x32xf32> to vector<8x8xf32>
    %54 = vector.extract_strided_slice %12 {offsets = [0, 16], sizes = [8, 8], strides = [1, 1]} : vector<8x32xf32> to vector<8x8xf32>
    %55 = vector.extract_strided_slice %13 {offsets = [0, 16], sizes = [8, 8], strides = [1, 1]} : vector<8x32xf32> to vector<8x8xf32>
    %cst_25 = arith.constant dense<0.000000e+00> : vector<8x8xf32>
    %56 = tpu.matmul %53, %54, %cst_25 {dimension_numbers = #tpu.dot_dimension_numbers<[1], [1], [0], [0], [0, 0, 1, 0], [], []>} : vector<8x8xf32>, vector<8x8xf32>, vector<8x8xf32> -> vector<8x8xf32>
    %57 = vector.broadcast %20 : vector<1x8xf32> to vector<8x8xf32>
    %58 = arith.addf %56, %57 : vector<8x8xf32>
    %cst_26 = arith.constant dense<0xFF800000> : vector<8xf32>
    %59 = vector.multi_reduction <maximumf>, %58, %cst_26 [1] : vector<8x8xf32> to vector<8xf32>
    %60 = vector.shape_cast %59 : vector<8xf32> to vector<8x1xf32>
    %61 = vector.broadcast %60 : vector<8x1xf32> to vector<8x8xf32>
    %62 = arith.subf %58, %61 : vector<8x8xf32>
    %63 = math.exp %62 : vector<8x8xf32>
    %cst_27 = arith.constant dense<0.000000e+00> : vector<8xf32>
    %64 = vector.multi_reduction <add>, %63, %cst_27 [1] : vector<8x8xf32> to vector<8xf32>
    %65 = vector.shape_cast %64 : vector<8xf32> to vector<8x1xf32>
    %66 = vector.broadcast %65 : vector<8x1xf32> to vector<8x8xf32>
    %67 = arith.divf %63, %66 : vector<8x8xf32>
    %cst_28 = arith.constant dense<0.000000e+00> : vector<8x8xf32>
    %68 = tpu.matmul %67, %55, %cst_28 {dimension_numbers = #tpu.dot_dimension_numbers<[1], [0], [0], [1], [0, 0, 1, 1], [], []>} : vector<8x8xf32>, vector<8x8xf32>, vector<8x8xf32> -> vector<8x8xf32>
    %69 = vector.extract_strided_slice %9 {offsets = [0, 24], sizes = [8, 8], strides = [1, 1]} : vector<8x32xf32> to vector<8x8xf32>
    %70 = vector.extract_strided_slice %12 {offsets = [0, 24], sizes = [8, 8], strides = [1, 1]} : vector<8x32xf32> to vector<8x8xf32>
    %71 = vector.extract_strided_slice %13 {offsets = [0, 24], sizes = [8, 8], strides = [1, 1]} : vector<8x32xf32> to vector<8x8xf32>
    %cst_29 = arith.constant dense<0.000000e+00> : vector<8x8xf32>
    %72 = tpu.matmul %69, %70, %cst_29 {dimension_numbers = #tpu.dot_dimension_numbers<[1], [1], [0], [0], [0, 0, 1, 0], [], []>} : vector<8x8xf32>, vector<8x8xf32>, vector<8x8xf32> -> vector<8x8xf32>
    %73 = vector.broadcast %20 : vector<1x8xf32> to vector<8x8xf32>
    %74 = arith.addf %72, %73 : vector<8x8xf32>
    %cst_30 = arith.constant dense<0xFF800000> : vector<8xf32>
    %75 = vector.multi_reduction <maximumf>, %74, %cst_30 [1] : vector<8x8xf32> to vector<8xf32>
    %76 = vector.shape_cast %75 : vector<8xf32> to vector<8x1xf32>
    %77 = vector.broadcast %76 : vector<8x1xf32> to vector<8x8xf32>
    %78 = arith.subf %74, %77 : vector<8x8xf32>
    %79 = math.exp %78 : vector<8x8xf32>
    %cst_31 = arith.constant dense<0.000000e+00> : vector<8xf32>
    %80 = vector.multi_reduction <add>, %79, %cst_31 [1] : vector<8x8xf32> to vector<8xf32>
    %81 = vector.shape_cast %80 : vector<8xf32> to vector<8x1xf32>
    %82 = vector.broadcast %81 : vector<8x1xf32> to vector<8x8xf32>
    %83 = arith.divf %79, %82 : vector<8x8xf32>
    %cst_32 = arith.constant dense<0.000000e+00> : vector<8x8xf32>
    %84 = tpu.matmul %83, %71, %cst_32 {dimension_numbers = #tpu.dot_dimension_numbers<[1], [0], [0], [1], [0, 0, 1, 1], [], []>} : vector<8x8xf32>, vector<8x8xf32>, vector<8x8xf32> -> vector<8x8xf32>
    %85 = tpu.concatenate %36, %52, %68, %84 in 1 : vector<8x8xf32>, vector<8x8xf32>, vector<8x8xf32>, vector<8x8xf32> -> vector<8x32xf32>
    %c0_33 = arith.constant 0 : index
    %c0_34 = arith.constant 0 : index
    %86 = vector.load %arg7[%c0_33, %c0_34] : memref<32x32xf32, #tpu.memory_space<vmem>>, vector<32x32xf32>
    %cst_35 = arith.constant dense<0.000000e+00> : vector<8x32xf32>
    %87 = tpu.matmul %85, %86, %cst_35 {dimension_numbers = #tpu.dot_dimension_numbers<[1], [0], [0], [1], [0, 0, 1, 1], [], []>} : vector<8x32xf32>, vector<32x32xf32>, vector<8x32xf32> -> vector<8x32xf32>
    %c0_36 = arith.constant 0 : index
    %c0_37 = arith.constant 0 : index
    %88 = vector.load %arg8[%c0_36, %c0_37] : memref<1x32xf32, #tpu.memory_space<vmem>>, vector<1x32xf32>
    %89 = vector.broadcast %88 : vector<1x32xf32> to vector<8x32xf32>
    %90 = arith.addf %87, %89 : vector<8x32xf32>
    %91 = arith.extf %1 : vector<8x32xbf16> to vector<8x32xf32>
    %92 = arith.addf %90, %91 : vector<8x32xf32>
    %cst_38 = arith.constant dense<0.000000e+00> : vector<8xf32>
    %93 = vector.multi_reduction <add>, %92, %cst_38 [1] : vector<8x32xf32> to vector<8xf32>
    %94 = vector.shape_cast %93 : vector<8xf32> to vector<8x1xf32>
    %cst_39 = arith.constant 3.200000e+01 : f32
    %95 = vector.broadcast %cst_39 : f32 to vector<8x1xf32>
    %96 = arith.divf %94, %95 : vector<8x1xf32>
    %97 = vector.broadcast %96 : vector<8x1xf32> to vector<8x32xf32>
    %98 = arith.subf %92, %97 : vector<8x32xf32>
    %99 = arith.mulf %98, %98 : vector<8x32xf32>
    %cst_40 = arith.constant dense<0.000000e+00> : vector<8xf32>
    %100 = vector.multi_reduction <add>, %99, %cst_40 [1] : vector<8x32xf32> to vector<8xf32>
    %101 = vector.shape_cast %100 : vector<8xf32> to vector<8x1xf32>
    %cst_41 = arith.constant 3.200000e+01 : f32
    %102 = vector.broadcast %cst_41 : f32 to vector<8x1xf32>
    %103 = arith.divf %101, %102 : vector<8x1xf32>
    %104 = vector.broadcast %96 : vector<8x1xf32> to vector<8x32xf32>
    %105 = arith.subf %92, %104 : vector<8x32xf32>
    %cst_42 = arith.constant 9.99999974E-6 : f32
    %106 = vector.broadcast %cst_42 : f32 to vector<8x1xf32>
    %107 = arith.addf %103, %106 : vector<8x1xf32>
    %108 = math.rsqrt %107 : vector<8x1xf32>
    %109 = vector.broadcast %108 : vector<8x1xf32> to vector<8x32xf32>
    %110 = arith.mulf %105, %109 : vector<8x32xf32>
    %c0_43 = arith.constant 0 : index
    %c0_44 = arith.constant 0 : index
    %111 = vector.load %arg9[%c0_43, %c0_44] : memref<1x32xf32, #tpu.memory_space<vmem>>, vector<1x32xf32>
    %112 = vector.broadcast %111 : vector<1x32xf32> to vector<8x32xf32>
    %113 = arith.mulf %110, %112 : vector<8x32xf32>
    %c0_45 = arith.constant 0 : index
    %c0_46 = arith.constant 0 : index
    %114 = vector.load %arg10[%c0_45, %c0_46] : memref<1x32xf32, #tpu.memory_space<vmem>>, vector<1x32xf32>
    %115 = vector.broadcast %114 : vector<1x32xf32> to vector<8x32xf32>
    %116 = arith.addf %113, %115 : vector<8x32xf32>
    %117 = arith.truncf %116 : vector<8x32xf32> to vector<8x32xbf16>
    %c0_47 = arith.constant 0 : index
    %c0_48 = arith.constant 0 : index
    %c0_49 = arith.constant 0 : index
    %118 = vector.load %arg11[%c0_47, %c0_48, %c0_49] : memref<1x8x32xbf16, #tpu.memory_space<vmem>>, vector<1x8x32xbf16>
    %119 = vector.shape_cast %118 : vector<1x8x32xbf16> to vector<8x32xbf16>
    %120 = vector.shape_cast %117 : vector<8x32xbf16> to vector<1x8x32xbf16>
    tpu.vector_store %arg11[%c0_47, %c0_48, %c0_49], %120 {strides = array<i32>} : memref<1x8x32xbf16, #tpu.memory_space<vmem>>, vector<1x8x32xbf16>,
    return
  }
  func.func @transform_0(%arg0: i32, %arg1: i32) -> (i32, i32, i32) {
    %c0_i32 = arith.constant 0 : i32
    %c0_i32_0 = arith.constant 0 : i32
    return %arg0, %arg1, %c0_i32 : i32, i32, i32
  }
  func.func @transform_1(%arg0: i32, %arg1: i32) -> (i32, i32, i32) {
    %c0_i32 = arith.constant 0 : i32
    %c0_i32_0 = arith.constant 0 : i32
    %c0_i32_1 = arith.constant 0 : i32
    return %arg0, %c0_i32, %c0_i32_0 : i32, i32, i32
  }
  func.func @transform_2(%arg0: i32, %arg1: i32) -> (i32, i32, i32) {
    %c0_i32 = arith.constant 0 : i32
    %c0_i32_0 = arith.constant 0 : i32
    %c0_i32_1 = arith.constant 0 : i32
    return %arg0, %c0_i32, %c0_i32_0 : i32, i32, i32
  }
  func.func @transform_3(%arg0: i32, %arg1: i32) -> (i32, i32) {
    %c0_i32 = arith.constant 0 : i32
    %c0_i32_0 = arith.constant 0 : i32
    %c0_i32_1 = arith.constant 0 : i32
    return %c0_i32, %c0_i32_0 : i32, i32
  }
  func.func @transform_4(%arg0: i32, %arg1: i32) -> (i32, i32) {
    %c0_i32 = arith.constant 0 : i32
    %c0_i32_0 = arith.constant 0 : i32
    %c0_i32_1 = arith.constant 0 : i32
    return %c0_i32, %c0_i32_0 : i32, i32
  }
  func.func @transform_5(%arg0: i32, %arg1: i32) -> (i32, i32) {
    %c0_i32 = arith.constant 0 : i32
    %c0_i32_0 = arith.constant 0 : i32
    %c0_i32_1 = arith.constant 0 : i32
    return %c0_i32, %c0_i32_0 : i32, i32
  }
  func.func @transform_6(%arg0: i32, %arg1: i32) -> (i32, i32) {
    %c0_i32 = arith.constant 0 : i32
    %c0_i32_0 = arith.constant 0 : i32
    %c0_i32_1 = arith.constant 0 : i32
    return %c0_i32, %c0_i32_0 : i32, i32
  }
  func.func @transform_7(%arg0: i32, %arg1: i32) -> (i32, i32) {
    %c0_i32 = arith.constant 0 : i32
    %c0_i32_0 = arith.constant 0 : i32
    %c0_i32_1 = arith.constant 0 : i32
    return %c0_i32, %c0_i32_0 : i32, i32
  }
  func.func @transform_8(%arg0: i32, %arg1: i32) -> (i32, i32) {
    %c0_i32 = arith.constant 0 : i32
    %c0_i32_0 = arith.constant 0 : i32
    %c0_i32_1 = arith.constant 0 : i32
    return %c0_i32, %c0_i32_0 : i32, i32
  }
  func.func @transform_9(%arg0: i32, %arg1: i32) -> (i32, i32, i32) {
    %c0_i32 = arith.constant 0 : i32
    %c0_i32_0 = arith.constant 0 : i32
    return %arg0, %arg1, %c0_i32 : i32, i32, i32
  }
}

</mosaic_0001>

<bundles_post_ra>
// kernel: tpu_custom_call.1
= control target key start
LH: loop header
LB: loop body
LE: loop exit
PB: predicated region body
PF: predicated region fallthrough
CT: control target
= control target key end

     0   :  { %s2457_s0 = inlined_call_operand.hbm [shape: bf16[2,8,32], index: 0, kind: input, shape index: {}]   ;;  %s2458_s1 = inlined_call_operand.hbm [shape: bf16[2,8,32], index: 1, kind: input, shape index: {}]   ;;  %s2459_s2 = inlined_call_operand.vmem [shape: f32[2,1,8], index: 2, kind: input, shape index: {}]   ;;  %s2460_s3 = inlined_call_operand.hbm [shape: f32[32,32], index: 3, kind: input, shape index: {}]   ;;  %s2461_s4 = inlined_call_operand.hbm [shape: f32[32,64], index: 4, kind: input, shape index: {}]   ;;  %s2462_s5 = inlined_call_operand.hbm [shape: f32[32,32], index: 5, kind: input, shape index: {}]   ;;  %s2463_s6 = inlined_call_operand.vmem [shape: f32[1,32], index: 6, kind: input, shape index: {}]   ;;  %s2464_s7 = inlined_call_operand.vmem [shape: f32[1,32], index: 7, kind: input, shape index: {}]   ;;  %s2465_s8 = inlined_call_operand.vmem [shape: f32[1,32], index: 8, kind: input, shape index: {}]   ;;  %s2466_s9 = inlined_call_operand.hbm [shape: bf16[2,8,32], index: 9, kind: output, shape index: {}]  }
   0x1   :  { %2472 = sst [smem:[#allocation20_spill]] %s2457_s0 }
   0x2   :  { %2473 = sst [smem:[#allocation21_spill]] %s2460_s3 }
   0x3   :  { %2474 = sst [smem:[#allocation22_spill]] %s2461_s4 }
   0x4   :  { %2475 = sst [smem:[#allocation23_spill]] %s2462_s5 }
   0x5   :  { %14 = vsyncpa [#allocation3], 0 }
   0x6   :  { %16 = vsyncpa [#allocation3 + $0x1], 0 }
   0x7   :  { %17 = vsyncpa [#allocation6], 0 }
   0x8   :  { %19 = vsyncpa [#allocation6 + $0x1], 0 }
   0x9   :  { %20 = vsyncpa [#allocation9], 0 }
   0xa   :  { %21 = vsyncpa [#allocation4], 0 }
   0xb   :  { %23 = vsyncpa [#allocation4 + $0x1], 0  ;;  %s2151_s30 = smov 0   ;;  %s2153_s10 = smov 0  }
   0xc   :  { %s2155_s11 = smov 0   ;;  %s2157_s12 = smov 0  }
   0xd   :  { %s2159_s13 = smov 0   ;;  %s2161_s14 = smov 0  }
   0xe LB: > { %2476 = sst [smem:[#allocation17_spill]] %s2058_s30  ;;  %s2182_s15 = sadd.s32 4294967295, %s2078_s14   ;;  %s2078_s14 = sphi %s2161_s14, %s29_s14   ;;  %s2074_s13 = sphi %s2159_s13, %s2504_s13   ;;  %s2070_s12 = sphi %s2157_s12, %s2503_s12   ;;  %s2066_s11 = sphi %s2155_s11, %s2502_s11   ;;  %s2062_s10 = sphi %s2153_s10, %s2501_s10   ;;  %s2058_s30 = sphi %s2151_s30, %s2500_s30  }
   0xf   : > { %s1578_s16 = sadd.s32 4294967294, %s2078_s14   ;;  %p63_p0 = scmp.ne.s32.totalorder %s2062_s10, %s2058_s30 }
  0x10   : > { %p2467_p1 = scmp.eq.s32.totalorder %s2182_s15, 0  ;;  %p273_p3 = scmp.eq.s32.totalorder %s1578_s16, 1 }
  0x11   : > { %p1579_p5 = scmp.ge.s32.totalorder %s2078_s14, 1  ;;  %p280_p7 = scmp.lt.s32.totalorder %s2078_s14, 3 }
  0x12   : > { %p2191_p4 = por %p2467_p1, %p63_p0  ;;  %p2196_p6 = por %p273_p3, %p63_p0 }
  0x13   : > { %p2201_p8 = pnand %p1579_p5, %p280_p7  ;;  %s2080_s20 = smov [#allocation7]  }
  0x14   : > { %s2477_s17 = scalar_select %p2191_p4, 1, 0 }
  0x15   : > { %s2478_s18 = scalar_select %p2196_p6, 1, 0 }
  0x16   : > { %s292_s21 = sshll.u32 %s2080_s20, 4  ;;  %p1739_p9 = pneg %p2201_p8  ;;  %s293_s21 = int_to_ptr.vmem [resolvable:$true] %s292_s21 }
  0x17   : > { %2479 = sst [smem:[#allocation18_spill]] %s2478_s18  ;;  %s2081_s23 = smov [#allocation8]  }
  0x18   : > { %p2210_p11 = pnand %p1739_p9, %p2467_p1  ;;  %s305_s24 = sshll.u32 %s2081_s23, 4  ;;  %s306_s24 = int_to_ptr.vmem [resolvable:$true] %s305_s24 }
  0x19   : > { %s2082_s25 = smov [#allocation10]   ;;  %s1863_s27 = scalar_lea.vmem %s293_s21, 512 }
  0x1a   : > { %s318_s26 = sshll.u32 %s2082_s25, 4  ;;  %p1854_p12 = pneg %p2210_p11  ;;  %s319_s26 = int_to_ptr.vmem [resolvable:$true] %s318_s26 }
  0x1b   : > { %p1864_p13 = scmp.ne.s32.totalorder %s293_s21, %s1863_s27  ;;  %p1871_p5 = scmp.lt.s32.totalorder %s293_s21, %s293_s21 }
  0x1c   : > { %p1872_p7 = scmp.lt.s32.totalorder %s1863_s27, %s1863_s27 }
  0x1d   : > { %p1866_p0 = pnand %p1864_p13, %p1854_p12 }
  0x1e   : > { %p1873_p9 = por %p1872_p7, %p1871_p5 }
  0x1f   : > { %p1867_p3 = pneg %p1866_p0 }
  0x21   : > { %p1874_p10 = pnand %p1873_p9, %p1867_p3 }
  0x23   : > { %1877 = shalt.err (!%p1874_p10)
}
  0x24   : > { %s2083_s28 = smov 128   ;;  %s2084_s29 = smov 8  }
  0x25   : > { %s2482_s3 = sld [smem:[#allocation21_spill]]  ;;  %s1889_s23 = scalar_lea.vmem %s306_s24, 512 }
  0x26   : > { %p1890_p1 = scmp.ne.s32.totalorder %s306_s24, %s1889_s23  ;;  %p1897_p2 = scmp.lt.s32.totalorder %s306_s24, %s306_s24 }
  0x27   : > { %p1898_p6 = scmp.lt.s32.totalorder %s1889_s23, %s1889_s23 }
  0x28   : > { %p1892_p13 = pnand %p1890_p1, %p1854_p12 }
  0x29   : > { %p1899_p5 = por %p1898_p6, %p1897_p2 }
  0x2a   : > { %p1893_p0 = pneg %p1892_p13 }
  0x2b   : > { %1742 = dma.hbm_to_vmem [thread:$0]  (!%p2210_p11), %s2482_s3, 512, %s293_s21, [#allocation6], %s2083_s28, %s2083_s28, %s2084_s29  }
  0x2c   : > { %p1900_p3 = pnand %p1899_p5, %p1893_p0 }
  0x2e   : > { %1903 = shalt.err (!%p1900_p3)
}
  0x2f   : > { %s2483_s4 = sld [smem:[#allocation22_spill]]  ;;  %s1915_s21 = scalar_lea.vmem %s319_s26, 512 }
  0x30   : > { %p1916_p10 = scmp.ne.s32.totalorder %s319_s26, %s1915_s21  ;;  %p1923_p9 = scmp.lt.s32.totalorder %s319_s26, %s319_s26 }
  0x31   : > { %p1924_p13 = scmp.lt.s32.totalorder %s1915_s21, %s1915_s21 }
  0x32   : > { %p1918_p7 = pnand %p1916_p10, %p1854_p12 }
  0x33   : > { %p1925_p4 = por %p1924_p13, %p1923_p9 }
  0x34   : > { %p1919_p1 = pneg %p1918_p7 }
  0x35   : > { %1745 = dma.hbm_to_vmem [thread:$0]  (!%p2210_p11), %s2483_s4, 512, %s306_s24, [#allocation9], %s2083_s28, %s2083_s28, %s2084_s29  }
  0x36   : > { %p1926_p2 = pnand %p1925_p4, %p1919_p1 }
  0x38   : > { %1929 = shalt.err (!%p1926_p2)
}
  0x39   : > { %s2484_s5 = sld [smem:[#allocation23_spill]]  ;;  %s50_s24 = sadd.s32 1, %s2066_s11 }
  0x3a   : > { %s41_s23 = sadd.s32 1, %s2074_s13  ;;  %p57_p4 = scmp.ne.s32.totalorder %s2066_s11, %s2062_s10 }
  0x3b   : > { %p43_p6 = scmp.ge.s32.totalorder %s41_s23, 2  ;;  %p58_p12 = scmp.eq.s32.totalorder %s2078_s14, 0 }
  0x3c   : > { %p2485_p0 = scmp.eq.s32.totalorder %s2182_s15, 1  ;;  %p1763_p3 = scmp.lt.s32.totalorder %s2078_s14, 2 }
  0x3d   : > { %s2506_s23 = smov (%p43_p6, %s41_s23), 0  ;;  %p59_p10 = por %p58_p12, %p57_p4 }
  0x3e   : > { %p2247_p5 = por %p2485_p0, %p57_p4  ;;  %2487 = sst [smem:[#allocation19_spill]] %s2506_s23 }
  0x3f   : > { %1748 = dma.hbm_to_vmem [thread:$0]  (!%p2210_p11), %s2484_s5, 512, %s319_s26, [#allocation9], %s2083_s28, %s2083_s28, %s2084_s29  }
  0x40   : > { %s341_s25 = sand.u32 1, %s2066_s11   ;;  %s45_s27 = ssub.s32 %s2074_s13, %s2506_s23 }
  0x41   : > { %p48_p11 = scmp.eq.s32.totalorder %s45_s27, 0  ;;  %s1584_s26 = sshll.u32 %s341_s25, 2 }
  0x42   : > { %s1585_s28 = sshll.u32 %s2074_s13, 6  ;;  %s2488_s0 = sld [smem:[#allocation20_spill]] }
  0x43   : > { %s2259_s29 = scalar_select %p48_p11, %s2066_s11, %s50_s24  }
  0x44   : > { %s345_s3 = scalar_lea.vmem [#allocation2], %s1584_s26  ;;  %p2266_p7 = pnand %p1763_p3, %p59_p10 }
  0x45   : > { %s353_s4 = sshll.u32 %s345_s3, 4  ;;  %s2273_s27 = scalar_lea.hbm %s2458_s1, %s1585_s28  ;;  %s354_s4 = int_to_ptr.vmem [resolvable:$true] %s353_s4 }
  0x46   : > { %s360_s24 = sand.u32 1, %s2078_s14   ;;  %s342_s23 = scalar_lea.sflag [#allocation3], %s341_s25 }
  0x47   : > { %p1932_p1 = pneg %p2266_p7  ;;  %s1943_s21 = scalar_lea.vmem %s354_s4, 64 }
  0x48   : > { %s351_s20 = scalar_lea.hbm %s2488_s0, %s1585_s28  ;;  %p1944_p9 = scmp.ne.s32.totalorder %s354_s4, %s1943_s21 }
  0x49   : > { %s2085_s3 = smov [#allocation2]  }
  0x4a   : > { %p1946_p13 = pnand %p1944_p9, %p1932_p1  ;;  %s1948_s16 = sshll.u32 %s2085_s3, 4  ;;  %s1949_s16 = int_to_ptr.vmem [resolvable:$false] %s1948_s16 }
  0x4b   : > { %s1950_s0 = scalar_lea.vmem %s1949_s16, 128  ;;  %p1951_p4 = scmp.lt.s32.totalorder %s354_s4, %s1949_s16 }
  0x4c   : > { %p1947_p2 = pneg %p1946_p13  ;;  %p1952_p6 = scmp.lt.s32.totalorder %s1950_s0, %s1943_s21 }
  0x4e   : > { %p1953_p12 = por %p1952_p6, %p1951_p4 }
  0x50   : > { %p1954_p0 = pnand %p1953_p12, %p1947_p2 }
  0x52   : > { %1957 = shalt.err (!%p1954_p0)
}
  0x53   : > { %1752 = dma.hbm_to_vmem [thread:$0]  (!%p2266_p7), %s351_s20, 64, %s354_s4, %s342_s23  }
  0x54   : > { %s364_s30 = scalar_lea.vmem [#allocation5], %s1584_s26  ;;  %s361_s25 = scalar_lea.sflag [#allocation6], %s360_s24 }
  0x55   : > { %s371_s18 = sshll.u32 %s364_s30, 4  ;;  %s2086_s3 = smov [#allocation5]   ;;  %s372_s18 = int_to_ptr.vmem [resolvable:$true] %s371_s18 }
  0x56   : > { %s1971_s28 = scalar_lea.vmem %s372_s18, 64  ;;  %s1976_s16 = sshll.u32 %s2086_s3, 4  ;;  %s1977_s16 = int_to_ptr.vmem [resolvable:$false] %s1976_s16 }
  0x57   : > { %p1972_p3 = scmp.ne.s32.totalorder %s372_s18, %s1971_s28  ;;  %s1978_s0 = scalar_lea.vmem %s1977_s16, 128 }
  0x58   : > { %p1979_p9 = scmp.lt.s32.totalorder %s372_s18, %s1977_s16  ;;  %p1980_p13 = scmp.lt.s32.totalorder %s1978_s0, %s1971_s28 }
  0x59   : > { %p1974_p10 = pnand %p1972_p3, %p1932_p1 }
  0x5a   : > { %p1981_p2 = por %p1980_p13, %p1979_p9 }
  0x5b   : > { %p1975_p11 = pneg %p1974_p10 }
  0x5d   : > { %p1982_p4 = pnand %p1981_p2, %p1975_p11 }
  0x5f   : > { %1985 = shalt.err (!%p1982_p4)
}
  0x60   : > { %1755 = dma.hbm_to_vmem [thread:$0]  (!%p2266_p7), %s2273_s27, 64, %s372_s18, %s361_s25  }
  0x61   : > { %386 = sbr.rel (%p2201_p8) target bundleno = 1780 (0x6f4), region = 56  ;;  %s2292_s4 = sand.u32 (!%p2201_p8), 1, %s2062_s10  }
  0x62   : > { %s2295_s23 = sshll.u32 (!%p2201_p8), %s2292_s4, 2  ;;  %s389_s26 = scalar_lea.sflag (!%p2201_p8), [#allocation3], %s2292_s4 }
  0x63   : > { %s392_s20 = scalar_lea.vmem (!%p2201_p8), [#allocation2], %s2295_s23  ;;  %p2490_p1 = scmp.ne.s32.totalorder (!%p2201_p8), %s2477_s17, 0 }
  0x66   : > { %2037 = dma.done.wait (%p2490_p1), %s389_s26, 64  }
  0x67   : > { %2039 = vsyncadd (%p2490_p1), %s389_s26, 4294967232  ;;  %s397_s5 = sand.u32 1, %s2182_s15   ;;  %s401_s27 = scalar_lea.vmem [#allocation5], %s2295_s23 }
  0x68   : > { %s398_s19 = scalar_lea.sflag [#allocation6], %s397_s5 }
  0x69   : > { %2041 = dma.done.wait (%p2490_p1), %s398_s19, 64  }
  0x6a   : > { %2043 = vsyncadd (%p2490_p1), %s398_s19, 4294967232  ;;  %p2491_p8 = scmp.eq.s32.totalorder %s2182_s15, 0 }
  0x6c   : > { %2045 = dma.done.wait (%p2491_p8), [#allocation6], 512   ;;  %p2492_p7 = pmov %p2491_p8 }
  0x6e   : > { %2047 = vsyncadd (%p2492_p7), [#allocation6], 4294966784  ;;  %p2493_p6 = pmov %p2492_p7 }
  0x70   : > { %2049 = dma.done.wait (%p2493_p6), [#allocation9], 1024   ;;  %p2494_p12 = pmov %p2493_p6 }
  0x71   : > { %v2087_v0 = vmov 0.0   ;;  %vm2088_vm0 = vmmov 0   ;;  %v466_v1 = vld [vmem:[#allocation7 + $0x18] sm:$0xff]  ;;  %v465_v3 = vld [vmem:[#allocation7 + $0x10] sm:$0xff]  ;;  %v464_v5 = vld [vmem:[#allocation7 + $0x8] sm:$0xff]  ;;  %vm467_vm1 = vcmask 261120   ;;  %v623_v24 = vlaneseq }
  0x72   : > { %2051 = vsyncadd (%p2494_p12), [#allocation9], 4294966272  ;;  %1648 = vmatprep.subr.mxu0 %v2087_v0  ;;  %1659 = vmatprep.subr.mxu1 %v2087_v0  ;;  %v545_v2 = vld [vmem:[#allocation8 + $0x18] sm:$0xff]  ;;  %v544_v4 = vld [vmem:[#allocation8 + $0x10] sm:$0xff]  ;;  %vm628_vm2 = vcmask 64512   ;;  %s2089_s15 = smov 112  }
  0x73   : > { %1656 = vmatprep.mubr.msk.f32.mxu0 %vm2088_vm0, %v2087_v0  ;;  %1667 = vmatprep.mubr.msk.f32.mxu1 %vm2088_vm0, %v2087_v0  ;;  %v543_v6 = vld [vmem:[#allocation8 + $0x8] sm:$0xff]  ;;  %v2325_v7 = vld [vmem:[%s392_s20] sm:$0xf]  ;;  %v460_v8 = vld [vmem:[%s401_s27] sm:$0xf]  ;;  %s2090_s17 = smov 120  }
  0x74   : > { %1649 = vmatpush3.msra.mxu0 %v466_v1  ;;  %1660 = vmatpush3.msra.mxu1 %v545_v2  ;;  %v463_v9 = vld [vmem:[#allocation7] sm:$0xff]  ;;  %v461_v11 = vunpack.c.l.bf16 %v2325_v7  ;;  %v462_v12 = vunpack.c.l.bf16 %v460_v8  ;;  %s2091_s24 = smov 104   ;;  %p456_p0 = scmp.lt.s32.totalorder %s2070_s12, 1  ;;  %v624_v26 = vshrl.u32 %v623_v24, 7  ;;  %v2092_v28 = vmov -1.767767e+19  }
  0x75   : > { %1650 = vmatprep.subr.mxu0 %v2087_v0  ;;  %1661 = vmatprep.subr.mxu1 %v2087_v0  ;;  %v542_v10 = vld [vmem:[#allocation8] sm:$0xff]  ;;  %s2093_s28 = smov 96   ;;  %s2094_s3 = smov 80   ;;  %v1307_v24 = vld [vmem:[#allocation10 + $0x18] sm:$0xff]  ;;  %vm1300_vm4 = vcmask 130048   ;;  %vm1302_vm5 = vcmask 195584  }
  0x76   : > { %1651 = vmatpush3.msra.mxu0 %v465_v3  ;;  %1662 = vmatpush3.msra.mxu1 %v544_v4  ;;  %s457_s21 = scalar_select %p456_p0, %s2070_s12, 1  ;;  %v625_v27 = vsub.s32 0, %v624_v26  ;;  %v1305_v26 = vld [vmem:[#allocation10 + $0x8] sm:$0xff]  ;;  %v1611_v7 = vld [vmem:[%s2464_s7] ss:$0 sm:$0xff]  ;;  %vm1420_vm6 = vcmask 257024  }
  0x77   : > { %1652 = vmatprep.subr.mxu0 %v2087_v0  ;;  %1663 = vmatprep.subr.mxu1 %v2087_v0  ;;  %s2095_s16 = smov 72   ;;  %s2096_s0 = smov 88  }
  0x78   : > { %1653 = vmatpush3.msra.mxu0 %v464_v5  ;;  %1664 = vmatpush3.msra.mxu1 %v543_v6  ;;  %s458_s25 = scalar_lea.vmem %s2459_s2, %s457_s21  ;;  %s2097_s26 = smov 8  }
  0x79   : > { %1654 = vmatprep.subr.mxu0 %v2087_v0  ;;  %1665 = vmatprep.subr.mxu1 %v2087_v0  ;;  %v619_v25 = vld [vmem:[%s458_s25] sm:$0x1]  ;;  %s2098_s20 = smov 16   ;;  %s2099_s5 = smov 24  }
  0x7a   : > { %1655 = vmatpush3.msra.mxu0 %v463_v9  ;;  %1666 = vmatpush3.msra.mxu1 %v542_v10  ;;  %vm620_vm3 = vcmp.ne.f32.partialorder %v619_v25, 0.0  ;;  %v1306_v25 = vld [vmem:[#allocation10 + $0x10] sm:$0xff]  ;;  %s1614_s30 = sshll.u32 %s2070_s12, 6  ;;  %s455_s18 = scalar_lea.vmem [#allocation11], %s2295_s23 }
  0x7b   : > { %1657 = vmatmul.mubr.msk.f32.vlgmr.msra.gmra.mxu0 %vm467_vm1, %v461_v11  ;;  %1668 = vmatmul.mubr.msk.f32.vlgmr.msra.gmra.mxu1 %vm467_vm1, %v462_v12  ;;  %v621_v29 = vsel %vm620_vm3, 0.0, %v2092_v28  ;;  %s1437_s25 = sshll.u32 %s455_s18, 4  ;;  %s1438_s25 = int_to_ptr.vmem [resolvable:$true] %s1437_s25 }
  0x7c   : > { %1670 = vmatprep.subr.mxu1 %v2087_v0  ;;  %1672 = vmatprep.mubr.msk.f32.mxu1 %vm2088_vm0, %v2087_v0  ;;  %v626_v30 = vrot.slane %v621_v29, %v625_v27  ;;  %v1304_v27 = vld [vmem:[#allocation10] sm:$0xff] }
  0x7d   : > { %1680 = vmatprep.subr.mxu0 %v2087_v0  ;;  %1682 = vmatprep.mubr.msk.f32.mxu0 %vm2088_vm0, %v2087_v0 }
 0x13b   : > { %v537_v13 = vpop.f32.mrf.mxu0  ;;  %v2342_v14 = vpop.f32.mrf.mxu1 }
 0x13c   : > { %v541_v15 = vmul.f32 0.17677669, %v537_v13  ;;  %959 = vrot.lane.b32.xlu1 %v2342_v14, %s2089_s15  ;;  %794 = vrot.lane.b32.xlu0 %v2342_v14, %s2090_s17 }
 0x13d   : > { %1671 = vmatpush3.xpose.msk.msra.mxu1 %vm628_vm2, %v2342_v14  ;;  %v1658_v16 = vpop.f32.mrf.mxu0  ;;  %v1669_v17 = vpop.f32.mrf.mxu1 }
 0x13e   : > { %1675 = vmatprep.subr.mxu1 %v2087_v0 }
 0x140   : > { %1673 = vmatmul.mubr.msk.f32.vlgmr.msra.gmra.mxu1 %vm628_vm2, %v541_v15  ;;  %957 = vrot.lane.b32.xlu1 %v541_v15, %s2089_s15 }
 0x141   : > { %792 = vrot.lane.b32.xlu0 %v541_v15, %s2090_s17  ;;  %1677 = vmatprep.mubr.msk.f32.mxu1 %vm2088_vm0, %v2087_v0 }
 0x144   : > { %1122 = vrot.lane.b32.xlu1 %v541_v15, %s2091_s24 }
 0x145   : > { %1124 = vrot.lane.b32.xlu0 %v2342_v14, %s2091_s24 }
 0x1ae   : > { %v795_v18 = vpop.permute.xlu0 %794  ;;  %v960_v19 = vpop.permute.xlu1 %959 }
 0x1af   : > { %1681 = vmatpush3.xpose.msk.msra.mxu0 %vm628_vm2, %v795_v18 }
 0x1b0   : > { %1690 = vmatprep.subr.mxu0 %v2087_v0 }
 0x1b2   : > { %v958_v21 = vpop.permute.xlu1 %957 }
 0x1b3   : > { %v793_v20 = vpop.permute.xlu0 %792 }
 0x1b4   : > { %1683 = vmatmul.mubr.msk.f32.vlgmr.msra.gmra.mxu0 %vm628_vm2, %v793_v20 }
 0x1b5   : > { %1691 = vmatpush3.xpose.msk.msra.mxu0 %vm628_vm2, %v960_v19  ;;  %1692 = vmatprep.mubr.msk.f32.mxu0 %vm2088_vm0, %v2087_v0 }
 0x1b6   : > { %1700 = vmatprep.subr.mxu0 %v2087_v0  ;;  %v1123_v23 = vpop.permute.xlu1 %1122 }
 0x1b7   : > { %v1125_v22 = vpop.permute.xlu0 %1124 }
 0x1b8   : > { %1693 = vmatmul.mubr.msk.f32.vlgmr.msra.gmra.mxu0 %vm628_vm2, %v958_v21 }
 0x1b9   : > { %1701 = vmatpush3.xpose.msk.msra.mxu0 %vm628_vm2, %v1125_v22  ;;  %1702 = vmatprep.mubr.msk.f32.mxu0 %vm2088_vm0, %v2087_v0 }
 0x1ba   : > { %1710 = vmatprep.subr.mxu0 %v2087_v0 }
 0x1bc   : > { %1703 = vmatmul.mubr.msk.f32.vlgmr.msra.gmra.mxu0 %vm628_vm2, %v1123_v23 }
 0x1bd   : > { %1718 = vmatprep.mubr.msk.f32.mxu0 %vm2088_vm0, %v2087_v0  ;;  %1711 = vmatpush3.msra.mxu0 %v1307_v24 }
 0x1be   : > { %1712 = vmatprep.subr.mxu0 %v2087_v0 }
 0x1bf   : > { %1713 = vmatpush3.msra.mxu0 %v1306_v25 }
 0x1c0   : > { %1714 = vmatprep.subr.mxu0 %v2087_v0 }
 0x1c1   : > { %1715 = vmatpush3.msra.mxu0 %v1305_v26 }
 0x1c2   : > { %1716 = vmatprep.subr.mxu0 %v2087_v0 }
 0x1c3   : > { %1717 = vmatpush3.msra.mxu0 %v1304_v27 }
 0x200   : > { %v701_v31 = vpop.f32.mrf.mxu1 }
 0x201   : > { %v702_v32 = vadd.f32 %v701_v31, %v626_v30 }
 0x202   : > { %v1674_v33 = vpop.f32.mrf.mxu1 }
 0x203   : > { %v705_v34 = vsel %vm628_vm2, %v702_v32, -inf }
 0x204   : > { %706 = vmax.xlane.f32.xlu0 %v705_v34 }
 0x274   : > { %v866_v35 = vpop.f32.mrf.mxu0 }
 0x275   : > { %v867_v36 = vadd.f32 %v866_v35, %v626_v30 }
 0x276   : > { %v1684_v37 = vpop.f32.mrf.mxu0 }
 0x277   : > { %v870_v38 = vsel %vm628_vm2, %v867_v36, -inf }
 0x278   : > { %871 = vmax.xlane.f32.xlu1 %v870_v38  ;;  %v1031_v39 = vpop.f32.mrf.mxu0 }
 0x279   : > { %v1032_v40 = vadd.f32 %v1031_v39, %v626_v30  ;;  %v1609_v39 = vld [vmem:[%s2463_s6] ss:$0 sm:$0xff] }
 0x27a   : > { %v1694_v41 = vpop.f32.mrf.mxu0 }
 0x27b   : > { %v1035_v42 = vsel %vm628_vm2, %v1032_v40, -inf }
 0x27c   : > { %1036 = vmax.xlane.f32.xlu0 %v1035_v42  ;;  %v1196_v43 = vpop.f32.mrf.mxu0 }
 0x27d   : > { %v1197_v44 = vadd.f32 %v1196_v43, %v626_v30 }
 0x27e   : > { %v1704_v45 = vpop.f32.mrf.mxu0 }
 0x27f   : > { %v1200_v46 = vsel %vm628_vm2, %v1197_v44, -inf }
 0x280   : > { %1201 = vmax.xlane.f32.xlu0 %v1200_v46 }
 0x289   : > { %716 = vrot.lane.b32.xlu1 %v2342_v14, %s2093_s28 }
 0x28d   : > { %v707_v47 = vpop.xlane.xlu0 %706 }
 0x28e   : > { %v708_v48 = vsub.f32 %v702_v32, %v707_v47 }
 0x290   : > { %v709_v49 = vmul.f32 1.442695, %v708_v48 }
 0x292   : > { %1834 = vpow2.f32 %v709_v49 }
 0x29f   : > { %v1835_v50 = vpop.eup %1834 }
 0x2a0   : > { %v711_v51 = vsel %vm628_vm2, %v1835_v50, 0.0 }
 0x2ad   : > { %712 = vadd.xlane.f32.xlu1 %v711_v51 }
 0x301   : > { %v872_v52 = vpop.xlane.xlu1 %871 }
 0x302   : > { %v873_v53 = vsub.f32 %v867_v36, %v872_v52 }
 0x304   : > { %v874_v54 = vmul.f32 1.442695, %v873_v53 }
 0x305   : > { %v717_v55 = vpop.permute.xlu1 %716  ;;  %v1037_v56 = vpop.xlane.xlu0 %1036 }
 0x306   : > { %1836 = vpow2.f32 %v874_v54  ;;  %v1038_v57 = vsub.f32 %v1032_v40, %v1037_v56  ;;  %1676 = vmatpush3.msra.mxu1 %v717_v55  ;;  %v1612_v54 = vld [vmem:[%s2465_s8] ss:$0 sm:$0xff] }
 0x307   : > { %1685 = vmatprep.subr.mxu1 %v2087_v0 }
 0x308   : > { %v1039_v58 = vmul.f32 1.442695, %v1038_v57 }
 0x309   : > { %v1202_v59 = vpop.xlane.xlu0 %1201 }
 0x30a   : > { %1838 = vpow2.f32 %v1039_v58  ;;  %v1203_v60 = vsub.f32 %v1197_v44, %v1202_v59 }
 0x30c   : > { %v1204_v61 = vmul.f32 1.442695, %v1203_v60 }
 0x30e   : > { %1840 = vpow2.f32 %v1204_v61 }
 0x313   : > { %v1837_v62 = vpop.eup %1836 }
 0x314   : > { %v876_v63 = vsel %vm628_vm2, %v1837_v62, 0.0 }
 0x315   : > { %877 = vadd.xlane.f32.xlu0 %v876_v63 }
 0x317   : > { %v1839_v1 = vpop.eup %1838 }
 0x318   : > { %v1041_v2 = vsel %vm628_vm2, %v1839_v1, 0.0 }
 0x319   : > { %1042 = vadd.xlane.f32.xlu1 %v1041_v2 }
 0x31b   : > { %v1841_v3 = vpop.eup %1840 }
 0x31c   : > { %v1206_v4 = vsel %vm628_vm2, %v1841_v3, 0.0 }
 0x31d   : > { %1207 = vadd.xlane.f32.xlu0 %v1206_v4 }
 0x32a   : > { %1046 = vrot.lane.b32.xlu1 %v2342_v14, %s2094_s3 }
 0x32e   : > { %1211 = vrot.lane.b32.xlu1 %v2342_v14, %s2095_s16  ;;  %s1435_s16 = scalar_lea.hbm %s2466_s9, %s1614_s30 }
 0x333   : > { %881 = vrot.lane.b32.xlu0 %v2342_v14, %s2096_s0  ;;  %s1423_s0 = scalar_lea.sflag [#allocation4], %s2292_s4 }
 0x336   : > { %v713_v5 = vpop.xlane.xlu1 %712 }
 0x337   : > { %1842 = vrcp.f32 %v713_v5 }
 0x344   : > { %v1843_v6 = vpop.eup %1842 }
 0x345   : > { %v715_v8 = vmul.f32 %v1843_v6, %v1835_v50 }
 0x347   : > { %1678 = vmatmul.mubr.msk.f32.vlgmr.msra.gmra.mxu1 %vm628_vm2, %v715_v8 }
 0x348   : > { %1687 = vmatprep.mubr.msk.f32.mxu1 %vm2088_vm0, %v2087_v0 }
 0x39e   : > { %v878_v9 = vpop.xlane.xlu0 %877 }
 0x39f   : > { %1844 = vrcp.f32 %v878_v9 }
 0x3a2   : > { %v1043_v10 = vpop.xlane.xlu1 %1042 }
 0x3a3   : > { %1846 = vrcp.f32 %v1043_v10 }
 0x3a6   : > { %v1208_v12 = vpop.xlane.xlu0 %1207  ;;  %v1047_v14 = vpop.permute.xlu1 %1046 }
 0x3a7   : > { %1848 = vrcp.f32 %v1208_v12 }
 0x3aa   : > { %v882_v13 = vpop.permute.xlu0 %881  ;;  %v1212_v19 = vpop.permute.xlu1 %1211 }
 0x3ab   : > { %1686 = vmatpush3.msra.mxu1 %v882_v13 }
 0x3ac   : > { %v1845_v15 = vpop.eup %1844  ;;  %1695 = vmatprep.subr.mxu1 %v2087_v0 }
 0x3ad   : > { %v880_v16 = vmul.f32 %v1845_v15, %v1837_v62 }
 0x3af   : > { %1688 = vmatmul.mubr.msk.f32.vlgmr.msra.gmra.mxu1 %vm628_vm2, %v880_v16 }
 0x3b0   : > { %v1847_v17 = vpop.eup %1846  ;;  %1696 = vmatpush3.msra.mxu1 %v1047_v14  ;;  %1697 = vmatprep.mubr.msk.f32.mxu1 %vm2088_vm0, %v2087_v0 }
 0x3b1   : > { %1705 = vmatprep.subr.mxu1 %v2087_v0  ;;  %v1045_v18 = vmul.f32 %v1847_v17, %v1839_v1 }
 0x3b3   : > { %1698 = vmatmul.mubr.msk.f32.vlgmr.msra.gmra.mxu1 %vm628_vm2, %v1045_v18 }
 0x3b4   : > { %v1849_v20 = vpop.eup %1848  ;;  %1706 = vmatpush3.msra.mxu1 %v1212_v19  ;;  %1707 = vmatprep.mubr.msk.f32.mxu1 %vm2088_vm0, %v2087_v0 }
 0x3b5   : > { %v1210_v21 = vmul.f32 %v1849_v20, %v1841_v3 }
 0x3b7   : > { %1708 = vmatmul.mubr.msk.f32.vlgmr.msra.gmra.mxu1 %vm628_vm2, %v1210_v21 }
 0x407   : > { %v788_v22 = vpop.f32.mrf.mxu1 }
 0x409   : > { %v1679_v23 = vpop.f32.mrf.mxu1 }
 0x46f   : > { %v953_v28 = vpop.f32.mrf.mxu1 }
 0x470   : > { %1288 = vrot.lane.b32.xlu0 %v953_v28, %s2097_s26  ;;  %s1986_s26 = scalar_lea.vmem %s1438_s25, 64 }
 0x471   : > { %v1689_v29 = vpop.f32.mrf.mxu1  ;;  %p1987_p3 = scmp.ne.s32.totalorder %s1438_s25, %s1986_s26 }
 0x473   : > { %v1118_v30 = vpop.f32.mrf.mxu1  ;;  %p1988_p10 = pnand %p1987_p3, %p2247_p5 }
 0x474   : > { %1292 = vrot.lane.b32.xlu1 %v1118_v30, %s2098_s20  ;;  %s2100_s20 = smov [#allocation11]  }
 0x475   : > { %v1699_v31 = vpop.f32.mrf.mxu1  ;;  %p1989_p11 = pneg %p1988_p10 }
 0x477   : > { %v1283_v32 = vpop.f32.mrf.mxu1 }
 0x478   : > { %1296 = vrot.lane.b32.xlu0 %v1283_v32, %s2099_s5  ;;  %s1990_s5 = sshll.u32 %s2100_s20, 4  ;;  %s1991_s5 = int_to_ptr.vmem [resolvable:$false] %s1990_s5 }
 0x479   : > { %v1709_v33 = vpop.f32.mrf.mxu1  ;;  %s1992_s12 = scalar_lea.vmem %s1991_s5, 128  ;;  %p1993_p9 = scmp.lt.s32.totalorder %s1438_s25, %s1991_s5 }
 0x47a   : > { %p1994_p13 = scmp.lt.s32.totalorder %s1992_s12, %s1986_s26 }
 0x47c   : > { %p1995_p2 = por %p1994_p13, %p1993_p9 }
 0x47e   : > { %p1996_p4 = pnand %p1995_p2, %p1989_p11 }
 0x4e2   : > { %v1289_v34 = vpop.permute.xlu0 %1288 }
 0x4e3   : > { %v1299_v0 = vsel %vm628_vm2, %v788_v22, %v1289_v34 }
 0x4e6   : > { %v1293_v35 = vpop.permute.xlu1 %1292 }
 0x4e7   : > { %v1301_v36 = vsel %vm1300_vm4, %v1299_v0, %v1293_v35 }
 0x4ea   : > { %v1297_v37 = vpop.permute.xlu0 %1296 }
 0x4eb   : > { %v1303_v38 = vsel %vm1302_vm5, %v1301_v36, %v1297_v37 }
 0x4ec   : > { %1719 = vmatmul.mubr.msk.f32.vlgmr.msra.gmra.mxu0 %vm467_vm1, %v1303_v38 }
 0x5ac   : > { %v1384_v40 = vpop.f32.mrf.mxu0 }
 0x5ad   : > { %v1385_v41 = vadd.f32 %v1609_v39, %v1384_v40 }
 0x5ae   : > { %v1720_v42 = vpop.f32.mrf.mxu0 }
 0x5af   : > { %v1388_v43 = vadd.f32 %v1385_v41, %v461_v11 }
 0x5b1   : > { %v1389_v44 = vsel %vm467_vm1, %v1388_v43, 0.0 }
 0x5b2   : > { %1390 = vadd.xlane.f32.xlu1 %v1389_v44 }
 0x63b   : > { %v1391_v45 = vpop.xlane.xlu1 %1390 }
 0x63c   : > { %v1393_v46 = vmul.f32 0.03125, %v1391_v45 }
 0x63e   : > { %v1394_v47 = vsub.f32 %v1388_v43, %v1393_v46 }
 0x640   : > { %v1395_v48 = vmul.f32 %v1394_v47, %v1394_v47 }
 0x642   : > { %v1396_v49 = vsel %vm467_vm1, %v1395_v48, 0.0 }
 0x643   : > { %1397 = vadd.xlane.f32.xlu0 %v1396_v49 }
 0x6cc   : > { %v1398_v50 = vpop.xlane.xlu0 %1397 }
 0x6cd   : > { %v1399_v51 = vmul.f32 0.03125, %v1398_v50 }
 0x6cf   : > { %v1400_v52 = vadd.f32 1e-05, %v1399_v51 }
 0x6d1   : > { %1850 = vrsqrt.f32 %v1400_v52 }
 0x6de   : > { %v1851_v53 = vpop.eup %1850 }
 0x6df   : > { %v1402_v11 = vmul.f32 %v1851_v53, %v1394_v47 }
 0x6e1   : > { %v1410_v55 = vmul.f32 %v1611_v7, %v1402_v11 }
 0x6e3   : > { %v1418_v56 = vadd.f32 %v1612_v54, %v1410_v55 }
 0x6e5   : > { %v1419_v57 = vpack.c.bf16 %v1418_v56, %v1418_v56 }
 0x6e7   : > { %1421 = vst.msk [vmem:[%s455_s18] sm:$0xf] %vm1420_vm6, %v1419_v57 }
 0x6e8   : > { %1999 = shalt.err (!%p1996_p4)
}
 0x6e9   : > { %s2000_s23 = scalar_lea.hbm %s1435_s16, 64  ;;  %s2004_s27 = scalar_lea.hbm %s2466_s9, 128 }
 0x6ea   : > { %p2001_p1 = scmp.ne.s32.totalorder %s1435_s16, %s2000_s23  ;;  %p2005_p6 = scmp.lt.s32.totalorder %s1435_s16, %s2466_s9 }
 0x6eb   : > { %p2006_p12 = scmp.lt.s32.totalorder %s2004_s27, %s2000_s23 }
 0x6ec   : > { %p2002_p8 = pnand %p2001_p1, %p2247_p5 }
 0x6ed   : > { %p2007_p0 = por %p2006_p12, %p2005_p6 }
 0x6ee   : > { %p2003_p7 = pneg %p2002_p8 }
 0x6f0   : > { %p2008_p3 = pnand %p2007_p0, %p2003_p7 }
 0x6f2   : > { %2011 = shalt.err (!%p2008_p3)
}
 0x6f3   : > { %1737 = dma.vmem_to_hbm [thread:$0]  (%p2247_p5), %s1438_s25, 64, %s1435_s16, %s1423_s0  }
 0x6f4 PF: > { %s2495_s24 = sld [smem:[#allocation17_spill]]  ;;  %p2498_p11 = scmp.ge.s32.totalorder %s2078_s14, 2 }
 0x6f5   : > { %s2496_s21 = sld [smem:[#allocation18_spill]] }
 0x6fa   : > { %s1449_s30 = sand.u32 1, %s2495_s24  }
 0x6fb   : > { %p2497_p10 = scmp.ne.s32.totalorder %s2496_s21, 0  ;;  %s1450_s18 = scalar_lea.sflag [#allocation4], %s1449_s30 }
 0x6fd   : > { %p1757_p9 = pnand %p2498_p11, %p2497_p10 }
 0x6ff   : > { %p1758_p13 = pneg %p1757_p9 }
 0x701   : > { %2053 = dma.done.wait (%p1758_p13), %s1450_s18, 64  }
 0x702   : > { %2055 = vsyncadd (%p1758_p13), %s1450_s18, 4294967232  ;;  %s29_s14 = sadd.s32 1, %s2078_s14   ;;  %s2499_s22 = sld [smem:[#allocation19_spill]] }
 0x703   : > { %p26_p2 = scmp.ge.s32.totalorder %s29_s14, 4   ;;  %s2500_s30 = smov %s2062_s10 }
 0x704   : > { %s2501_s10 = smov %s2066_s11  ;;  %s2502_s11 = smov %s2259_s29 }
 0x705   : > { %s2503_s12 = smov %s2074_s13  ;;  %28 = sbr.rel (!%p26_p2) target bundleno = 14 (0xe), region = 129 }
 0x708   : > { %s2504_s13 = smov %s2499_s22 }
 0x70a   :  { %1455 = vsyncpa [#allocation3], 1 }
 0x70b   :  { %1457 = vsyncpa [#allocation3 + $0x1], 1 }
 0x70c   :  { %1458 = vsyncpa [#allocation6], 1 }
 0x70d   :  { %1460 = vsyncpa [#allocation6 + $0x1], 1 }
 0x70e   :  { %1461 = vsyncpa [#allocation9], 1 }
 0x70f   :  { %1462 = vsyncpa [#allocation4], 1 }
 0x710   :  { %1464 = vsyncpa [#allocation4 + $0x1], 1 }

</bundles_post_ra>
